<compile_context>
chip_gen: v6e
topology: v6e:2x2x1
jax: 0.10.0
libtpu: 0.0.40
codegen_flags: <defaults>
</compile_context>

<pallas_src>
import functools
import math

import jax
import jax.numpy as jnp
from jax.experimental import pallas as pl
from jax.experimental.pallas import tpu as pltpu


# ---------------------------------------------------------------------------
# Kernels
# ---------------------------------------------------------------------------
def _topo_fwd_small_kernel(x_ref, w_ref, out_ref, *, cross_dtype):
    """Whole problem in one tile: out = ||x||^2 - 2 x.w + ||w||^2 (clamped >= 0)."""
    x = x_ref[...]
    w = w_ref[...]

    xw = jnp.dot(x.astype(cross_dtype), w.astype(cross_dtype),
                 preferred_element_type=jnp.float32)            # (B, O) on the MXU

    x32 = x.astype(jnp.float32)
    w32 = w.astype(jnp.float32)
    x2 = jnp.sum(x32 * x32, axis=1, keepdims=True)              # (B, 1)
    w2 = jnp.sum(w32 * w32, axis=0, keepdims=True)              # (1, O)

    out_ref[...] = jnp.maximum(x2 - 2.0 * xw + w2, 0.0).astype(out_ref.dtype)


def _topo_fwd_tiled_kernel(x_ref, w_ref, x2_ref, w2_ref, out_ref, *, cross_dtype):
    """Tiled path.  Grid = (i over B-tiles, j over O-tiles, k over D-tiles).

    x_ref:   (TB, TD) tile of x
    w_ref:   (TD, TO) tile of weights
    x2_ref:  (TB, 1)  precomputed ||x||^2 rows     (same block for all j, k)
    w2_ref:  (1, TO)  precomputed ||w||^2 columns  (same block for all i, k)
    out_ref: (TB, TO) f32 output tile; same (i, j) block for every k so it stays
             resident in VMEM and doubles as the cross-term accumulator.
    """
    k = pl.program_id(2)

    @pl.when(k == 0)
    def _init():
        out_ref[...] = jnp.zeros_like(out_ref)

    # Cross term on the MXU; plain x.w — the -2 and the squared norms are applied
    # once in the finalize step instead of every k iteration.
    out_ref[...] += jnp.dot(x_ref[...].astype(cross_dtype),
                            w_ref[...].astype(cross_dtype),
                            preferred_element_type=jnp.float32)

    @pl.when(k == pl.num_programs(2) - 1)
    def _finalize():
        out_ref[...] = jnp.maximum(
            x2_ref[...] - 2.0 * out_ref[...] + w2_ref[...], 0.0)


# ---------------------------------------------------------------------------
# Wrapper
# ---------------------------------------------------------------------------
def _round_up(n, m):
    return ((n + m - 1) // m) * m


@functools.lru_cache(maxsize=None)
def _vmem_capacity_bytes():
    try:
        return int(pltpu.get_tpu_info().vmem_capacity_bytes)
    except Exception:
        return 64 << 20  # conservative fallback (v7x per-TensorCore VMEM)


def _chip_tile_defaults():
    """Generation-aware tile targets + scoped-VMEM cap: (tb, to, td, vmem_cap)."""
    vmem = _vmem_capacity_bytes()
    if vmem <= (64 << 20):
        # v7x: 64 MiB VMEM per TensorCore — keep the double-buffered footprint
        # comfortably under ~40-48 MiB.
        return 256, 1024, 512, 48 << 20
    # v5e / v6e: 128 MiB physical VMEM; the binding limit is the 16/32 MiB
    # scoped default, so raise it explicitly and use larger 256-aligned tiles.
    return 512, 1024, 1024, 96 << 20


@functools.partial(
    jax.jit,
    static_argnames=("tile_b", "tile_o", "tile_d", "force_tiled",
                     "use_bf16_matmul", "w_buffers"))
def topological_map_forward(x, weights, *, tile_b=None, tile_o=None, tile_d=None,
                            force_tiled=False, use_bf16_matmul=False, w_buffers=2):
    """Squared Euclidean distance of each input row to every weight column.

    x:       (B, input_size)
    weights: (input_size, output_size)
    returns: (B, output_size) float32
    """
    B, D = x.shape
    D2, O = weights.shape
    assert D == D2, "x and weights disagree on input_size"

    # bf16 cross-term runs the MXU at native rate (~3-6x) but worsens the
    # cancellation in ||x||^2 - 2 x.w + ||w||^2 when x ~ w (the neurons argmin
    # cares about), so it is opt-in; default stays f32.
    cross_dtype = jnp.bfloat16 if use_bf16_matmul else jnp.float32

    # ---- small fast path: whole problem in a single VMEM tile -----------------
    footprint = 4 * (B * D + D * O + B * O)
    if (not force_tiled) and footprint <= (4 << 20):
        return pl.pallas_call(
            functools.partial(_topo_fwd_small_kernel, cross_dtype=cross_dtype),
            out_shape=jax.ShapeDtypeStruct((B, O), jnp.float32),
            grid_spec=pltpu.PrefetchScalarGridSpec(
                num_scalar_prefetch=0,
                grid=(1,),
                in_specs=[
                    pl.BlockSpec((B, D), lambda i: (0, 0)),
                    pl.BlockSpec((D, O), lambda i: (0, 0)),
                ],
                out_specs=pl.BlockSpec((B, O), lambda i: (0, 0)),
            ),
            compiler_params=pltpu.CompilerParams(
                dimension_semantics=("arbitrary",)),
            cost_estimate=pl.CostEstimate(
                flops=2 * B * D * O, transcendentals=0,
                bytes_accessed=4 * (B * D + D * O + B * O)),
        )(x, weights)

    # ---- tiled path: 3-D grid, output tile is the resident accumulator --------
    def_tb, def_to, def_td, vmem_cap = _chip_tile_defaults()
    tb = def_tb if tile_b is None else tile_b
    to = def_to if tile_o is None else tile_o
    td = def_td if tile_d is None else tile_d

    # Sublane-aligned B (8); lane/MXU-aligned O and D (multiples of 128; the
    # chip defaults are 256-multiples so every MXU pass is full width).
    TB = min(_round_up(tb, 8), _round_up(B, 8))
    TO = min(_round_up(to, 128), _round_up(O, 128))
    TD = min(_round_up(td, 128), _round_up(D, 128))

    # v7x megacore: if both parallel grid axes would have extent 1, split the O
    # axis so the second TensorCore gets work.
    if _vmem_capacity_bytes() <= (64 << 20) and B <= TB and O <= TO and TO >= 256:
        TO = _round_up(TO // 2, 128)

    Bp = _round_up(B, TB)
    Op = _round_up(O, TO)
    Dp = _round_up(D, TD)

    # Pad to tile multiples. Zero padding along D adds 0 to both norms and the
    # cross term (exact); padded B rows / O columns are sliced off afterwards.
    xp = x if (Bp == B and Dp == D) else jnp.pad(x, ((0, Bp - B), (0, Dp - D)))
    wp = weights if (Dp == D and Op == O) else jnp.pad(
        weights, ((0, Dp - D), (0, Op - O)))

    # Precompute the squared norms once (O(B*D + D*O) — negligible vs B*D*O) so
    # the k loop carries no VPU/XLU filler.
    x2 = jnp.sum(jnp.square(xp.astype(jnp.float32)), axis=1, keepdims=True)  # (Bp, 1)
    w2 = jnp.sum(jnp.square(wp.astype(jnp.float32)), axis=0, keepdims=True)  # (1, Op)

    grid = (Bp // TB, Op // TO, Dp // TD)

    # Optional deeper buffering on the w stream (largest per-step transfer).
    w_spec_kwargs = {}
    if w_buffers != 2:
        w_spec_kwargs["pipeline_mode"] = pl.Buffered(w_buffers)

    in_specs = [
        pl.BlockSpec((TB, TD), lambda i, j, k: (i, k)),
        pl.BlockSpec((TD, TO), lambda i, j, k: (k, j), **w_spec_kwargs),
        pl.BlockSpec((TB, 1), lambda i, j, k: (i, 0)),
        pl.BlockSpec((1, TO), lambda i, j, k: (0, j)),
    ]
    # Same (i, j) block for every k -> the output tile stays resident in VMEM
    # while the reduction axis sweeps, and serves as the accumulator.
    out_spec = pl.BlockSpec((TB, TO), lambda i, j, k: (i, j))

    buffered_bytes = 4 * (2 * TB * TD + max(2, w_buffers) * TD * TO
                          + 2 * TB * TO + 2 * (TB + TO))
    vmem_limit = int(min(vmem_cap, max(32 << 20, buffered_bytes + (4 << 20))))

    cost = pl.CostEstimate(
        flops=2 * Bp * Dp * Op,
        transcendentals=0,
        # Include the tile re-read factors: x is streamed once per O-tile and w
        # once per B-tile.
        bytes_accessed=4 * (Bp * Dp * grid[1] + Dp * Op * grid[0] + Bp * Op),
    )

    out = pl.pallas_call(
        functools.partial(_topo_fwd_tiled_kernel, cross_dtype=cross_dtype),
        out_shape=jax.ShapeDtypeStruct((Bp, Op), jnp.float32),
        grid_spec=pltpu.PrefetchScalarGridSpec(
            num_scalar_prefetch=0,
            grid=grid,
            in_specs=in_specs,
            out_specs=out_spec,
        ),
        compiler_params=pltpu.CompilerParams(
            # B/O tiles are independent (megacore-shardable); D is the reduction
            # axis and must stay sequential.
            dimension_semantics=("parallel", "parallel", "arbitrary"),
            vmem_limit_bytes=vmem_limit),
        cost_estimate=cost,
    )(xp, wp, x2, w2)

    if Bp != B or Op != O:
        out = out[:B, :O]
    return out


# ---------------------------------------------------------------------------
# Self-test
# ---------------------------------------------------------------------------
if __name__ == "__main__":
    key = jax.random.PRNGKey(0)

    def make_inputs(k, batch, input_size, output_size, scale=1e-4):
        kx, kw = jax.random.split(k)
        # Deterministic Xavier-normal init (scaled as in TopologicalMap.__init__).
        xavier_std = math.sqrt(2.0 / (input_size + output_size))
        weights = scale * xavier_std * jax.random.normal(
            kw, (input_size, output_size), dtype=jnp.float32)
        x = jax.random.normal(kx, (batch, input_size), dtype=jnp.float32)
        return x, weights

    def reference(x, weights):
        # Mirrors the PyTorch broadcast/reduction exactly.
        return jnp.sum((weights[None, :, :] - x[:, :, None]) ** 2, axis=1)

    k1, k2, k3 = jax.random.split(key, 3)

    # 1) Small fast path: output_dims=2, side=16 (output_size = 16**2 = 256).
    x_s, w_s = make_inputs(k1, 8, 32, 256)
    out_s = jax.block_until_ready(topological_map_forward(x_s, w_s))
    ref_s = reference(x_s, w_s)
    assert out_s.shape == (8, 256)
    assert jnp.allclose(out_s, ref_s, atol=1e-4, rtol=1e-4), "small-path mismatch"

    # 2) Tiled path (forced, small tiles so the 3-D grid and the k-accumulation
    #    into the resident output tile are genuinely exercised): grid = (2, 4, 2).
    x_t, w_t = make_inputs(k2, 16, 256, 1024)
    out_t = jax.block_until_ready(
        topological_map_forward(x_t, w_t, tile_b=8, tile_o=256, tile_d=128,
                                force_tiled=True))
    ref_t = reference(x_t, w_t)
    assert out_t.shape == (16, 1024)
    assert jnp.allclose(out_t, ref_t, atol=1e-4, rtol=1e-4), "tiled-path mismatch"

    # 3) Non-divisible shapes (exercise pad-to-tile + output slicing):
    #    side=30 -> output_size=900, input_size=200, batch=10.
    x_r, w_r = make_inputs(k3, 10, 200, 900, scale=1.0)
    out_r = jax.block_until_ready(
        topological_map_forward(x_r, w_r, tile_b=8, tile_o=256, tile_d=128,
                                force_tiled=True))
    ref_r = reference(x_r, w_r)
    assert out_r.shape == (10, 900)
    assert jnp.allclose(out_r, ref_r, atol=1e-3, rtol=1e-4), "ragged-path mismatch"

    # 4) Opt-in bf16 cross-term (native MXU rate); looser tolerance because of
    #    the cancellation in the distance expansion.
    out_b = jax.block_until_ready(
        topological_map_forward(x_t, w_t, tile_b=8, tile_o=256, tile_d=128,
                                force_tiled=True, use_bf16_matmul=True))
    assert jnp.allclose(out_b, ref_t, atol=1e-2, rtol=1e-2), "bf16-path mismatch"

    print("KERNEL_OK")
</pallas_src>

<mosaic_0001>
module attributes {stable_mosaic.version = 11 : i64} {
  func.func @_topo_fwd_small_kernel(%arg0: i32, %arg1: memref<8x32xf32, #tpu.memory_space<vmem>>, %arg2: memref<32x256xf32, #tpu.memory_space<vmem>>, %arg3: memref<8x256xf32, #tpu.memory_space<vmem>>) attributes {dimension_semantics = [#tpu.dimension_semantics<arbitrary>], iteration_bounds = array<i64: 1>, scalar_prefetch = 0 : i64, scratch_operands = 0 : i64, tpu.core_type = #tpu.core_type<tc>, window_params = [{pipeline_mode = #tpu.pipeline_mode<synchronous>, transform_indices = @transform_0, window_bounds = array<i64: 8, 32>}, {pipeline_mode = #tpu.pipeline_mode<synchronous>, transform_indices = @transform_1, window_bounds = array<i64: 32, 256>}, {pipeline_mode = #tpu.pipeline_mode<synchronous>, transform_indices = @transform_2, window_bounds = array<i64: 8, 256>}]} {
    %c0 = arith.constant 0 : index
    %c0_0 = arith.constant 0 : index
    %0 = vector.load %arg1[%c0, %c0_0] : memref<8x32xf32, #tpu.memory_space<vmem>>, vector<8x32xf32>
    %c0_1 = arith.constant 0 : index
    %c0_2 = arith.constant 0 : index
    %1 = vector.load %arg2[%c0_1, %c0_2] : memref<32x256xf32, #tpu.memory_space<vmem>>, vector<32x256xf32>
    %cst = arith.constant dense<0.000000e+00> : vector<8x256xf32>
    %2 = tpu.matmul %0, %1, %cst {dimension_numbers = #tpu.dot_dimension_numbers<[1], [0], [0], [1], [0, 0, 1, 1], [], []>} : vector<8x32xf32>, vector<32x256xf32>, vector<8x256xf32> -> vector<8x256xf32>
    %3 = arith.mulf %0, %0 : vector<8x32xf32>
    %cst_3 = arith.constant dense<0.000000e+00> : vector<8xf32>
    %4 = vector.multi_reduction <add>, %3, %cst_3 [1] : vector<8x32xf32> to vector<8xf32>
    %5 = vector.shape_cast %4 : vector<8xf32> to vector<8x1xf32>
    %6 = arith.mulf %1, %1 : vector<32x256xf32>
    %cst_4 = arith.constant dense<0.000000e+00> : vector<256xf32>
    %7 = vector.multi_reduction <add>, %6, %cst_4 [0] : vector<32x256xf32> to vector<256xf32>
    %8 = vector.shape_cast %7 : vector<256xf32> to vector<1x256xf32>
    %cst_5 = arith.constant 2.000000e+00 : f32
    %9 = vector.broadcast %cst_5 : f32 to vector<8x256xf32>
    %10 = arith.mulf %9, %2 : vector<8x256xf32>
    %11 = vector.broadcast %5 : vector<8x1xf32> to vector<8x256xf32>
    %12 = arith.subf %11, %10 : vector<8x256xf32>
    %13 = vector.broadcast %8 : vector<1x256xf32> to vector<8x256xf32>
    %14 = arith.addf %12, %13 : vector<8x256xf32>
    %cst_6 = arith.constant 0.000000e+00 : f32
    %15 = vector.broadcast %cst_6 : f32 to vector<8x256xf32>
    %16 = arith.maximumf %14, %15 : vector<8x256xf32>
    %c0_7 = arith.constant 0 : index
    %c0_8 = arith.constant 0 : index
    %17 = vector.load %arg3[%c0_7, %c0_8] : memref<8x256xf32, #tpu.memory_space<vmem>>, vector<8x256xf32>
    tpu.vector_store %arg3[%c0_7, %c0_8], %16 {strides = array<i32>} : memref<8x256xf32, #tpu.memory_space<vmem>>, vector<8x256xf32>,
    return
  }
  func.func @transform_0(%arg0: i32) -> (i32, i32) {
    %c0_i32 = arith.constant 0 : i32
    %c0_i32_0 = arith.constant 0 : i32
    %c0_i32_1 = arith.constant 0 : i32
    return %c0_i32, %c0_i32_0 : i32, i32
  }
  func.func @transform_1(%arg0: i32) -> (i32, i32) {
    %c0_i32 = arith.constant 0 : i32
    %c0_i32_0 = arith.constant 0 : i32
    %c0_i32_1 = arith.constant 0 : i32
    return %c0_i32, %c0_i32_0 : i32, i32
  }
  func.func @transform_2(%arg0: i32) -> (i32, i32) {
    %c0_i32 = arith.constant 0 : i32
    %c0_i32_0 = arith.constant 0 : i32
    %c0_i32_1 = arith.constant 0 : i32
    return %c0_i32, %c0_i32_0 : i32, i32
  }
}

</mosaic_0001>

<bundles_post_ra>
// kernel: topological_map_forward.1
= control target key start
LH: loop header
LB: loop body
LE: loop exit
PB: predicated region body
PF: predicated region fallthrough
CT: control target
= control target key end

     0   :  { %7 = vsyncpa [#allocation3], 0  ;;  %s281_s0 = inlined_call_operand.hbm [shape: f32[8,32], index: 0, kind: input, shape index: {}]   ;;  %s282_s1 = inlined_call_operand.hbm [shape: f32[32,256], index: 1, kind: input, shape index: {}]   ;;  %s283_s2 = inlined_call_operand.hbm [shape: f32[8,256], index: 2, kind: output, shape index: {}]  }
   0x1   :  { %8 = vsyncpa [#allocation6], 0 }
   0x2   :  { %9 = vsyncpa [#allocation4], 0  ;;  %s251_s9 = smov [#allocation2]   ;;  %s252_s11 = smov [#allocation5]  }
   0x3   :  { %s16_s10 = sshll.u32 %s251_s9, 4  ;;  %s25_s12 = sshll.u32 %s252_s11, 4  ;;  %s17_s10 = int_to_ptr.vmem [resolvable:$true] %s16_s10  ;;  %s26_s12 = int_to_ptr.vmem [resolvable:$true] %s25_s12 }
   0x4   :  { %s193_s13 = scalar_lea.vmem %s17_s10, 128  ;;  %p198_p1 = scmp.lt.s32.totalorder %s17_s10, %s17_s10 }
   0x5   :  { %p194_p0 = scmp.ne.s32.totalorder %s17_s10, %s193_s13  ;;  %p199_p2 = scmp.lt.s32.totalorder %s193_s13, %s193_s13 }
   0x7   :  { %p200_p3 = por %p199_p2, %p198_p1 }
   0x9   :  { %p201_p4 = pnand %p200_p3, %p194_p0 }
   0xb   :  { %204 = shalt.err (!%p201_p4)
}
   0xc   :  { %19 = dma.hbm_to_vmem [thread:$0]  %s281_s0, 128, %s17_s10, [#allocation3]  }
   0xd   :  { %s213_s16 = scalar_lea.vmem %s26_s12, 1024  ;;  %p218_p6 = scmp.lt.s32.totalorder %s26_s12, %s26_s12 }
   0xe   :  { %p214_p5 = scmp.ne.s32.totalorder %s26_s12, %s213_s16  ;;  %p219_p7 = scmp.lt.s32.totalorder %s213_s16, %s213_s16 }
  0x10   :  { %p220_p8 = por %p219_p7, %p218_p6 }
  0x12   :  { %p221_p9 = pnand %p220_p8, %p214_p5 }
  0x14   :  { %224 = shalt.err (!%p221_p9)
}
  0x15   :  { %s253_s17 = smov 256   ;;  %s254_s18 = smov 16  }
  0x16   :  { %31 = dma.hbm_to_vmem [thread:$0]  %s282_s1, 1024, %s26_s12, [#allocation6], %s253_s17, %s253_s17, %s254_s18  }
  0x17   :  { %245 = dma.done.wait [#allocation3], 128  }
  0x18   :  { %246 = vsyncadd [#allocation3], 4294967168 }
  0x19   :  { %247 = dma.done.wait [#allocation6], 1024  }
  0x1a   :  { %248 = vsyncadd [#allocation6], 4294966272  ;;  %v255_v0 = vmov 0.0   ;;  %v46_v1 = vld [vmem:[#allocation5 + $0x38] sm:$0xff]  ;;  %v45_v2 = vld [vmem:[#allocation5 + $0x30] sm:$0xff]  ;;  %vm47_vm0 = vcmask 261120  }
  0x1b   :  { %115 = vmatprep.mubr.f32.mxu0 %v255_v0  ;;  %v44_v3 = vld [vmem:[#allocation5 + $0x28] sm:$0xff]  ;;  %75 = vmatprep.subr.mxu0 %v46_v1  ;;  %v43_v4 = vld [vmem:[#allocation5 + $0x20] sm:$0xff]  ;;  %v42_v5 = vld [vmem:[#allocation5 + $0x18] sm:$0xff]  ;;  %v133_v17 = vmul.f32 %v46_v1, %v46_v1  ;;  %v132_v18 = vmul.f32 %v45_v2, %v45_v2  ;;  %s256_s0 = smov [#allocation7]  }
  0x1c   :  { %v41_v6 = vld [vmem:[#allocation5 + $0x10] sm:$0xff]  ;;  %76 = vmatpush1.msra.mxu0 %v45_v2  ;;  %v131_v7 = vmul.f32 %v44_v3, %v44_v3  ;;  %v129_v8 = vmul.f32 %v42_v5, %v42_v5  ;;  %v40_v10 = vld [vmem:[#allocation5 + $0x8] sm:$0xff]  ;;  %v39_v11 = vld [vmem:[#allocation5] sm:$0xff]  ;;  %v130_v13 = vmul.f32 %v43_v4, %v43_v4  ;;  %s168_s1 = sshll.u32 %s256_s0, 4  ;;  %s169_s1 = int_to_ptr.vmem [resolvable:$true] %s168_s1 }
  0x1d   :  { %v128_v9 = vmul.f32 %v41_v6, %v41_v6  ;;  %v38_v12 = vld [vmem:[#allocation2] sm:$0xff]  ;;  %77 = vmatprep.subr.mxu0 %v44_v3  ;;  %v127_v14 = vmul.f32 %v40_v10, %v40_v10  ;;  %v126_v15 = vmul.f32 %v39_v11, %v39_v11  ;;  %s225_s21 = scalar_lea.vmem %s169_s1, 256  ;;  %p230_p11 = scmp.lt.s32.totalorder %s169_s1, %s169_s1 }
  0x1e   :  { %v122_v16 = vmul.f32 %v38_v12, %v38_v12  ;;  %78 = vmatpush1.msra.mxu0 %v43_v4  ;;  %p226_p10 = scmp.ne.s32.totalorder %s169_s1, %s225_s21  ;;  %p231_p12 = scmp.lt.s32.totalorder %s225_s21, %s225_s21 }
  0x1f   :  { %79 = vmatprep.subr.mxu0 %v42_v5  ;;  %v143_v19 = vadd.f32 %v129_v8, %v127_v14  ;;  %v134_v20 = vadd.f32 %v128_v9, %v126_v15 }
  0x20   :  { %v123_v21 = vsel %vm47_vm0, %v122_v16, 0.0  ;;  %80 = vmatpush1.msra.mxu0 %v41_v6  ;;  %p232_p13 = por %p231_p12, %p230_p11 }
  0x21   :  { %124 = vadd.xlane.f32.xlu0 %v123_v21  ;;  %81 = vmatprep.subr.mxu0 %v40_v10  ;;  %v144_v22 = vadd.f32 %v143_v19, %v131_v7  ;;  %v135_v23 = vadd.f32 %v134_v20, %v130_v13 }
  0x22   :  { %82 = vmatpush1.msra.mxu0 %v39_v11  ;;  %p233_p0 = pnand %p232_p13, %p226_p10 }
  0x23   :  { %v145_v24 = vadd.f32 %v144_v22, %v133_v17  ;;  %v136_v25 = vadd.f32 %v135_v23, %v132_v18  ;;  %178 = vmatmul.mubr.msk.f32.vlgmr.msra.gmra.mxu0 %vm47_vm0, %v38_v12 }
  0x25   :  { %v137_v26 = vrot.slane %v136_v25, 4  ;;  %v146_v27 = vrot.slane %v145_v24, 4 }
  0x27   :  { %v138_v28 = vadd.f32 %v137_v26, %v136_v25  ;;  %v147_v29 = vadd.f32 %v146_v27, %v145_v24 }
  0x29   :  { %v139_v30 = vrot.slane %v138_v28, 2  ;;  %v148_v31 = vrot.slane %v147_v29, 2 }
  0x2b   :  { %v140_v32 = vadd.f32 %v139_v30, %v138_v28  ;;  %v149_v33 = vadd.f32 %v148_v31, %v147_v29 }
  0x2d   :  { %v141_v34 = vrot.slane %v140_v32, 1  ;;  %v150_v35 = vrot.slane %v149_v33, 1 }
  0x2f   :  { %v142_v39 = vadd.f32 %v141_v34, %v140_v32  ;;  %v151_v42 = vadd.f32 %v150_v35, %v149_v33 }
  0xaa   :  { %v125_v37 = vpop.xlane.xlu0 %124 }
  0xe3   :  { %v117_v36 = vpop.f32.mrf.mxu0 }
  0xe4   :  { %v152_v38 = vmul.f32 2.0, %v117_v36 }
  0xe5   :  { %v119_v40 = vpop.f32.mrf.mxu0 }
  0xe6   :  { %v153_v41 = vmul.f32 2.0, %v119_v40  ;;  %v154_v43 = vsub.f32 %v125_v37, %v152_v38 }
  0xe8   :  { %v155_v44 = vsub.f32 %v125_v37, %v153_v41  ;;  %v156_v45 = vadd.f32 %v154_v43, %v142_v39 }
  0xea   :  { %v157_v46 = vadd.f32 %v155_v44, %v151_v42  ;;  %v158_v47 = vmax.f32 %v156_v45, 0.0 }
  0xec   :  { %v159_v48 = vmax.f32 %v157_v46, 0.0  ;;  %160 = vst [vmem:[#allocation7] sm:$0xff] %v158_v47 }
  0xee   :  { %161 = vst [vmem:[#allocation7 + $0x8] sm:$0xff] %v159_v48 }
  0xef   :  { %236 = shalt.err (!%p233_p0)
}
  0xf0   :  { %171 = dma.vmem_to_hbm [thread:$0]  %s169_s1, 256, %s283_s2, [#allocation4]  }
  0xf1   :  { %249 = dma.done.wait [#allocation4], 256  }
  0xf2   :  { %250 = vsyncadd [#allocation4], 4294967040 }
  0xf3   :  { %175 = vsyncpa [#allocation3], 1 }
  0xf4   :  { %176 = vsyncpa [#allocation6], 1 }
  0xf5   :  { %177 = vsyncpa [#allocation4], 1 }

</bundles_post_ra>
